<compile_context>
chip_gen: v5e
topology: v5e:2x2
jax: 0.10.0
libtpu: 0.0.40
codegen_flags: <defaults>
</compile_context>

<pallas_src>
import functools
import itertools

import jax
import jax.numpy as jnp
import numpy as np
from jax.experimental import pallas as pl
from jax.experimental.pallas import tpu as pltpu

try:  # compiled LSAP if available; pure-Python fallback below otherwise
    from scipy.optimize import linear_sum_assignment as _scipy_lsa
except Exception:  # pragma: no cover
    _scipy_lsa = None

ALPHA = 0.25
GAMMA = 2.0


def _pow_gamma(x):
    # GAMMA is a module constant; branch resolved at trace time.
    if GAMMA == 2.0:
        return x * x
    return jnp.exp(GAMMA * jnp.log(jnp.maximum(x, 1e-30)))


# ---------------------------------------------------------------------------
# Pallas kernels
# ---------------------------------------------------------------------------
def _class_cost_kernel(logits_ref, cc_ref):
    """Focal class cost on an [tm, Cp] logits tile (N x C pre-pass).

    One stable softplus + one exp instead of sigmoid + two logs:
        s = softplus(-x) = -log(sigmoid(x))  ->  -log(p)
        x + s            = -log(1 - p)
        p = exp(-s)
    (differs from the reference's +1e-8 log floor only for |x| >~ 18)
    """
    x = logits_ref[...]
    sp = jnp.maximum(-x, 0.0) + jnp.log(1.0 + jnp.exp(-jnp.abs(x)))  # -log(p)
    p = jnp.exp(-sp)
    neg = (1.0 - ALPHA) * _pow_gamma(p) * (x + sp)          # (1-a) p^g -log(1-p)
    pos = ALPHA * _pow_gamma(1.0 - p) * sp                   # a (1-p)^g -log(p)
    cc_ref[...] = pos - neg


def _cost_tile_kernel(cc_ref, oh_ref, ocw_ref, tcw_ref, c_ref,
                      *, w_class, w_seg, w_iou):
    """One (TM, TN) tile of the final cost matrix.

    cc_ref : [TM, Cp] per-row class costs (all classes)
    oh_ref : [Cp, TN] one-hot(tgt_ids) columns
    ocw_ref: [TM, 2]  predicted (center, width)
    tcw_ref: [2, TN]  target (center; width)
    """
    ocw = ocw_ref[...]                       # [TM, 2]
    tcw = tcw_ref[...]                       # [2, TN]
    oc, ow = ocw[:, 0:1], ocw[:, 1:2]        # [TM, 1]
    tc, tw = tcw[0:1, :], tcw[1:2, :]        # [1, TN]
    o1, o2 = oc - 0.5 * ow, oc + 0.5 * ow
    t1, t2 = tc - 0.5 * tw, tc + 0.5 * tw

    # L1 cdist on (center, width)
    cost_seg = jnp.abs(oc - tc) + jnp.abs(ow - tw)                   # [TM, TN]

    # IoU of 1-D segments; exact divide (DMA-bound kernel, EUP has slack)
    inter = jnp.maximum(jnp.minimum(o2, t2) - jnp.maximum(o1, t1), 0.0)
    union = (o2 - o1) + (t2 - t1) - inter
    cost_iou = -inter / (union + 1e-8)

    # Class-cost gather fused as a one-hot matmul on the otherwise-idle MXU.
    cost_class = jnp.dot(cc_ref[...], oh_ref[...],
                         preferred_element_type=jnp.float32)         # [TM, TN]

    c_ref[...] = w_seg * cost_seg + w_class * cost_class + w_iou * cost_iou


# ---------------------------------------------------------------------------
# Pallas wrappers
# ---------------------------------------------------------------------------
def _class_cost_pallas(logits_p):
    n_p, c_p = logits_p.shape
    # >=2 grid steps whenever possible so both v7x TensorCores are used.
    tm = min(512, max(8, n_p // 2))
    return pl.pallas_call(
        _class_cost_kernel,
        out_shape=jax.ShapeDtypeStruct((n_p, c_p), jnp.float32),
        grid=(n_p // tm,),
        in_specs=[pl.BlockSpec((tm, c_p), lambda i: (i, 0))],
        out_specs=pl.BlockSpec((tm, c_p), lambda i: (i, 0)),
        compiler_params=pltpu.CompilerParams(
            dimension_semantics=("parallel",)),
    )(logits_p)


def _cost_matrix_pallas(cc_nc, onehot, ocw, tcw, w_class, w_seg, w_iou,
                        tile_m=512, tile_n=1024):
    n_p, c_p = cc_nc.shape
    t_p = onehot.shape[1]
    # (512, 1024) f32 tiles amortize the ~0.35us/step overhead; the
    # double-buffered working set (~6 MB) fits v5e's 16 MiB scoped-VMEM
    # default and v6e/v7x's 32 MiB.  Clamp to guarantee >=2 parallel steps.
    tm = min(tile_m, max(8, n_p // 2))
    tn = min(tile_n, max(128, t_p // 2))
    kernel = functools.partial(_cost_tile_kernel, w_class=w_class,
                               w_seg=w_seg, w_iou=w_iou)
    return pl.pallas_call(
        kernel,
        out_shape=jax.ShapeDtypeStruct((n_p, t_p), jnp.float32),
        grid=(n_p // tm, t_p // tn),
        in_specs=[pl.BlockSpec((tm, c_p), lambda i, j: (i, 0)),   # class costs
                  pl.BlockSpec((c_p, tn), lambda i, j: (0, j)),   # one-hot
                  pl.BlockSpec((tm, 2), lambda i, j: (i, 0)),     # pred (c,w)
                  pl.BlockSpec((2, tn), lambda i, j: (0, j))],    # tgt  (c;w)
        out_specs=pl.BlockSpec((tm, tn), lambda i, j: (i, j)),
        compiler_params=pltpu.CompilerParams(
            dimension_semantics=("parallel", "parallel")),
    )(cc_nc, onehot, ocw, tcw)


# ---------------------------------------------------------------------------
# Single jitted device function (keyed on bucketed shapes + static weights)
# ---------------------------------------------------------------------------
@functools.partial(jax.jit,
                   static_argnames=("n_p", "c_p", "w_class", "w_seg", "w_iou"))
def _cost_matrix_device(logits, segs, tgt_ids_p, tcw_p, *,
                        n_p, c_p, w_class, w_seg, w_iou):
    bs, q, c = logits.shape
    n = bs * q
    logits_flat = logits.reshape(n, c).astype(jnp.float32)
    logits_p = jnp.zeros((n_p, c_p), jnp.float32).at[:n, :c].set(logits_flat)

    ocw = segs.reshape(n, 2).astype(jnp.float32)
    ocw_p = (jnp.zeros((n_p, 2), jnp.float32).at[:, 1].set(1.0)
             .at[:n, :].set(ocw))

    # one-hot(tgt_ids) [Cp, Tp]; padded ids are -1 -> all-zero columns
    onehot = (tgt_ids_p[None, :] ==
              jnp.arange(c_p, dtype=jnp.int32)[:, None]).astype(jnp.float32)

    cc_nc = _class_cost_pallas(logits_p)                     # [Np, Cp]
    return _cost_matrix_pallas(cc_nc, onehot, ocw_p, tcw_p,
                               w_class, w_seg, w_iou)        # [Np, Tp]


# ---------------------------------------------------------------------------
# Shape bucketing (avoid a recompile for every distinct target count)
# ---------------------------------------------------------------------------
def _next_pow2(x):
    x = max(int(x), 1)
    return 1 << (x - 1).bit_length()


def _bucket(x, minimum):
    return max(minimum, _next_pow2(x))


def _build_cost_matrix(logits, segs, tgt_ids, tgt_seg, w_class, w_seg, w_iou):
    """Returns the [N, T] cost matrix as a numpy array (unpadded)."""
    bs, q, c = logits.shape
    n = bs * q
    tgt_ids_np = np.asarray(tgt_ids, np.int32).reshape(-1)
    tgt_seg_np = np.asarray(tgt_seg, np.float32).reshape(-1, 2)
    t = int(tgt_ids_np.shape[0])

    n_p = _bucket(n, 8)
    t_p = _bucket(max(t, 1), 128)
    c_p = _bucket(c, 128)

    # tiny host-side padding of target data (bucketed -> few recompiles)
    ids_p = np.full((t_p,), -1, np.int32)
    ids_p[:t] = tgt_ids_np
    tcw_p = np.zeros((2, t_p), np.float32)
    tcw_p[1, :] = 1.0
    tcw_p[0, :t] = tgt_seg_np[:, 0]
    tcw_p[1, :t] = tgt_seg_np[:, 1]

    c_pad = _cost_matrix_device(jnp.asarray(logits), jnp.asarray(segs),
                                jnp.asarray(ids_p), jnp.asarray(tcw_p),
                                n_p=n_p, c_p=c_p,
                                w_class=float(w_class), w_seg=float(w_seg),
                                w_iou=float(w_iou))
    # slice on device so only the real [N, T] block crosses D2H
    return np.asarray(jax.device_get(c_pad[:n, :t]))


# ---------------------------------------------------------------------------
# Host-side assignment
# TODO(synk): the Hungarian LSAP is a sequential, data-dependent host loop with
# no clean Pallas equivalent; solved on host (scipy when available).
# ---------------------------------------------------------------------------
def _jv_lsa(cost):
    """Pure-Python JV-style optimal assignment (fallback when scipy absent)."""
    cost = np.asarray(cost, dtype=np.float64)
    transposed = False
    if cost.shape[0] > cost.shape[1]:
        cost = cost.T
        transposed = True
    n, m = cost.shape                       # n <= m
    u = np.zeros(n + 1)
    v = np.zeros(m + 1)
    p = np.zeros(m + 1, dtype=np.int64)
    way = np.zeros(m + 1, dtype=np.int64)
    for i in range(1, n + 1):
        p[0] = i
        j0 = 0
        minv = np.full(m + 1, np.inf)
        used = np.zeros(m + 1, dtype=bool)
        while True:
            used[j0] = True
            i0 = p[j0]
            delta = np.inf
            j1 = 0
            for j in range(1, m + 1):
                if not used[j]:
                    cur = cost[i0 - 1, j - 1] - u[i0] - v[j]
                    if cur < minv[j]:
                        minv[j] = cur
                        way[j] = j0
                    if minv[j] < delta:
                        delta = minv[j]
                        j1 = j
            for j in range(0, m + 1):
                if used[j]:
                    u[p[j]] += delta
                    v[j] -= delta
                else:
                    minv[j] -= delta
            j0 = j1
            if p[j0] == 0:
                break
        while True:
            j1 = way[j0]
            p[j0] = p[j1]
            j0 = j1
            if j0 == 0:
                break
    rows, cols = [], []
    for j in range(1, m + 1):
        if p[j] != 0:
            rows.append(p[j] - 1)
            cols.append(j - 1)
    rows = np.asarray(rows, dtype=np.int64)
    cols = np.asarray(cols, dtype=np.int64)
    if transposed:
        rows, cols = cols, rows
    order = np.argsort(rows)
    return rows[order], cols[order]


def _linear_sum_assignment(cost):
    if _scipy_lsa is not None:
        i, j = _scipy_lsa(np.asarray(cost, np.float64))
        return np.asarray(i, np.int64), np.asarray(j, np.int64)
    return _jv_lsa(cost)


def _brute_force_cost(cost):
    """Optimal assignment cost by enumeration (tiny matrices, test only)."""
    cost = np.asarray(cost, np.float64)
    r, c = cost.shape
    if r < c:
        cost = cost.T
        r, c = cost.shape
    best = None
    for rows in itertools.permutations(range(r), c):
        s = cost[list(rows), list(range(c))].sum()
        if best is None or s < best:
            best = s
    return best


# ---------------------------------------------------------------------------
# Matcher
# ---------------------------------------------------------------------------
class HungarianMatcher:
    def __init__(self, cost_class: float = 1, cost_seg: float = 1,
                 cost_iou: float = 1):
        assert cost_class != 0 or cost_seg != 0 or cost_iou != 0, \
            "all costs cant be 0"
        self.cost_class = float(cost_class)
        self.cost_seg = float(cost_seg)
        self.cost_iou = float(cost_iou)

    def __call__(self, outputs, targets):
        logits = jnp.asarray(outputs["pred_logits"], jnp.float32)   # [bs, Q, C]
        segs = jnp.asarray(outputs["pred_segments"], jnp.float32)   # [bs, Q, 2]
        bs, num_queries, num_classes = logits.shape

        tgt_ids = np.concatenate(
            [np.asarray(v["labels"]) for v in targets]).astype(np.int32)
        tgt_seg = np.concatenate(
            [np.asarray(v["segments"], np.float32) for v in targets])
        # PyTorch would raise on an out-of-range class index; check explicitly.
        assert tgt_ids.size == 0 or (tgt_ids.min() >= 0
                                     and tgt_ids.max() < num_classes), \
            "target label out of range"
        t = int(tgt_ids.shape[0])

        c_np = _build_cost_matrix(logits, segs, tgt_ids, tgt_seg,
                                  self.cost_class, self.cost_seg,
                                  self.cost_iou)
        c_np = c_np.reshape(bs, num_queries, t)

        sizes = [int(np.asarray(v["segments"]).shape[0]) for v in targets]
        results = []
        off = 0
        for b, nt in enumerate(sizes):
            sub = c_np[b, :, off:off + nt]
            i, j = _linear_sum_assignment(sub)
            results.append((np.asarray(i, np.int64), np.asarray(j, np.int64)))
            off += nt
        return results


# ---------------------------------------------------------------------------
# Numpy reference for the cost matrix (matches the PyTorch forward)
# ---------------------------------------------------------------------------
def _reference_cost_numpy(logits, segs, tgt_ids, tgt_seg, wc, ws, wi):
    logits = np.asarray(logits, np.float64)
    segs = np.asarray(segs, np.float64)
    bs, q, _ = logits.shape
    out_prob = 1.0 / (1.0 + np.exp(-logits.reshape(bs * q, -1)))
    out_seg = segs.reshape(bs * q, 2)
    neg = (1 - ALPHA) * out_prob ** GAMMA * -np.log(1 - out_prob + 1e-8)
    pos = ALPHA * (1 - out_prob) ** GAMMA * -np.log(out_prob + 1e-8)
    cost_class = pos[:, tgt_ids] - neg[:, tgt_ids]
    cost_seg = np.abs(out_seg[:, None, :] - tgt_seg[None, :, :]).sum(-1)
    o = np.stack([out_seg[:, 0] - 0.5 * out_seg[:, 1],
                  out_seg[:, 0] + 0.5 * out_seg[:, 1]], -1)
    tt = np.stack([tgt_seg[:, 0] - 0.5 * tgt_seg[:, 1],
                   tgt_seg[:, 0] + 0.5 * tgt_seg[:, 1]], -1)
    inter = np.clip(np.minimum(o[:, None, 1], tt[None, :, 1])
                    - np.maximum(o[:, None, 0], tt[None, :, 0]), 0, None)
    union = (o[:, 1] - o[:, 0])[:, None] + (tt[:, 1] - tt[:, 0])[None, :] - inter
    cost_iou = -(inter / union)
    return ws * cost_seg + wc * cost_class + wi * cost_iou


if __name__ == "__main__":
    key = jax.random.PRNGKey(0)
    bs, num_queries, num_classes = 2, 8, 4
    k1, k2, k3, k4, k5, k6 = jax.random.split(key, 6)

    pred_logits = jax.random.normal(k1, (bs, num_queries, num_classes),
                                    jnp.float32)
    centers = jax.random.uniform(k2, (bs, num_queries, 1), minval=0.2, maxval=0.8)
    widths = jax.random.uniform(k3, (bs, num_queries, 1), minval=0.05, maxval=0.3)
    pred_segments = jnp.concatenate([centers, widths], axis=-1).astype(jnp.float32)

    sizes = [2, 3]
    targets = []
    lkeys = jax.random.split(k4, len(sizes))
    skeys = jax.random.split(k5, len(sizes))
    wkeys = jax.random.split(k6, len(sizes))
    for b, nt in enumerate(sizes):
        labels = jax.random.randint(lkeys[b], (nt,), 0, num_classes)
        tc = jax.random.uniform(skeys[b], (nt, 1), minval=0.2, maxval=0.8)
        tw = jax.random.uniform(wkeys[b], (nt, 1), minval=0.05, maxval=0.3)
        targets.append({"labels": labels,
                        "segments": jnp.concatenate([tc, tw], -1).astype(jnp.float32)})

    matcher = HungarianMatcher(cost_class=1.0, cost_seg=1.0, cost_iou=1.0)
    indices = matcher({"pred_logits": pred_logits,
                       "pred_segments": pred_segments}, targets)

    # ---- correctness: Pallas cost matrix vs numpy reference -----------------
    tgt_ids_np = np.concatenate([np.asarray(t["labels"]) for t in targets])
    tgt_seg_np = np.concatenate([np.asarray(t["segments"]) for t in targets])
    ref_c = _reference_cost_numpy(pred_logits, pred_segments, tgt_ids_np,
                                  tgt_seg_np, 1.0, 1.0, 1.0)
    c_kernel = _build_cost_matrix(pred_logits, pred_segments,
                                  tgt_ids_np.astype(np.int32),
                                  tgt_seg_np.astype(np.float32),
                                  1.0, 1.0, 1.0)
    assert np.allclose(c_kernel, ref_c, atol=5e-3, rtol=5e-3), \
        "cost matrix mismatch"

    # ---- correctness: Hungarian solver is optimal (vs brute force) ----------
    c3 = c_kernel.reshape(bs, num_queries, -1)
    off = 0
    for b, nt in enumerate(sizes):
        sub = c3[b, :, off:off + nt]
        i, j = indices[b]
        assert i.dtype == np.int64 and j.dtype == np.int64
        assert len(i) == len(j) == min(num_queries, nt)
        got = float(np.asarray(sub)[i, j].sum())
        best = _brute_force_cost(sub)
        assert abs(got - best) < 1e-6, "assignment not optimal"
        off += nt

    jax.block_until_ready(pred_logits)
    print("KERNEL_OK")
</pallas_src>

<mosaic_0001>
module attributes {stable_mosaic.version = 11 : i64} {
  func.func @_class_cost_kernel(%arg0: i32, %arg1: memref<8x128xf32, #tpu.memory_space<vmem>>, %arg2: memref<8x128xf32, #tpu.memory_space<vmem>>) attributes {dimension_semantics = [#tpu.dimension_semantics<parallel>], iteration_bounds = array<i64: 2>, scalar_prefetch = 0 : i64, scratch_operands = 0 : i64, tpu.core_type = #tpu.core_type<tc>, window_params = [{transform_indices = @transform_0, window_bounds = array<i64: 8, 128>}, {transform_indices = @transform_1, window_bounds = array<i64: 8, 128>}]} {
    %c0 = arith.constant 0 : index
    %c0_0 = arith.constant 0 : index
    %0 = vector.load %arg1[%c0, %c0_0] : memref<8x128xf32, #tpu.memory_space<vmem>>, vector<8x128xf32>
    %cst = arith.constant 0.000000e+00 : f32
    %1 = vector.broadcast %cst : f32 to vector<8x128xf32>
    %2 = arith.subf %1, %0 : vector<8x128xf32>
    %cst_1 = arith.constant 0.000000e+00 : f32
    %3 = vector.broadcast %cst_1 : f32 to vector<8x128xf32>
    %4 = arith.maximumf %2, %3 : vector<8x128xf32>
    %5 = math.absf %0 : vector<8x128xf32>
    %cst_2 = arith.constant 0.000000e+00 : f32
    %6 = vector.broadcast %cst_2 : f32 to vector<8x128xf32>
    %7 = arith.subf %6, %5 : vector<8x128xf32>
    %8 = math.exp %7 : vector<8x128xf32>
    %cst_3 = arith.constant 1.000000e+00 : f32
    %9 = vector.broadcast %cst_3 : f32 to vector<8x128xf32>
    %10 = arith.addf %9, %8 : vector<8x128xf32>
    %11 = math.log %10 : vector<8x128xf32>
    %12 = arith.addf %4, %11 : vector<8x128xf32>
    %cst_4 = arith.constant 0.000000e+00 : f32
    %13 = vector.broadcast %cst_4 : f32 to vector<8x128xf32>
    %14 = arith.subf %13, %12 : vector<8x128xf32>
    %15 = math.exp %14 : vector<8x128xf32>
    %16 = arith.mulf %15, %15 : vector<8x128xf32>
    %cst_5 = arith.constant 7.500000e-01 : f32
    %17 = vector.broadcast %cst_5 : f32 to vector<8x128xf32>
    %18 = arith.mulf %17, %16 : vector<8x128xf32>
    %19 = arith.addf %0, %12 : vector<8x128xf32>
    %20 = arith.mulf %18, %19 : vector<8x128xf32>
    %cst_6 = arith.constant 1.000000e+00 : f32
    %21 = vector.broadcast %cst_6 : f32 to vector<8x128xf32>
    %22 = arith.subf %21, %15 : vector<8x128xf32>
    %23 = arith.mulf %22, %22 : vector<8x128xf32>
    %cst_7 = arith.constant 2.500000e-01 : f32
    %24 = vector.broadcast %cst_7 : f32 to vector<8x128xf32>
    %25 = arith.mulf %24, %23 : vector<8x128xf32>
    %26 = arith.mulf %25, %12 : vector<8x128xf32>
    %27 = arith.subf %26, %20 : vector<8x128xf32>
    %c0_8 = arith.constant 0 : index
    %c0_9 = arith.constant 0 : index
    %28 = vector.load %arg2[%c0_8, %c0_9] : memref<8x128xf32, #tpu.memory_space<vmem>>, vector<8x128xf32>
    tpu.vector_store %arg2[%c0_8, %c0_9], %27 {strides = array<i32>} : memref<8x128xf32, #tpu.memory_space<vmem>>, vector<8x128xf32>,
    return
  }
  func.func @transform_0(%arg0: i32) -> (i32, i32) {
    %c0_i32 = arith.constant 0 : i32
    %c0_i32_0 = arith.constant 0 : i32
    return %arg0, %c0_i32 : i32, i32
  }
  func.func @transform_1(%arg0: i32) -> (i32, i32) {
    %c0_i32 = arith.constant 0 : i32
    %c0_i32_0 = arith.constant 0 : i32
    return %arg0, %c0_i32 : i32, i32
  }
}

module attributes {stable_mosaic.version = 11 : i64} {
  func.func @_cost_tile_kernel(%arg0: i32, %arg1: i32, %arg2: memref<8x128xf32, #tpu.memory_space<vmem>>, %arg3: memref<128x128xf32, #tpu.memory_space<vmem>>, %arg4: memref<8x2xf32, #tpu.memory_space<vmem>>, %arg5: memref<2x128xf32, #tpu.memory_space<vmem>>, %arg6: memref<8x128xf32, #tpu.memory_space<vmem>>) attributes {dimension_semantics = [#tpu.dimension_semantics<parallel>, #tpu.dimension_semantics<parallel>], iteration_bounds = array<i64: 2, 1>, scalar_prefetch = 0 : i64, scratch_operands = 0 : i64, tpu.core_type = #tpu.core_type<tc>, window_params = [{transform_indices = @transform_0, window_bounds = array<i64: 8, 128>}, {transform_indices = @transform_1, window_bounds = array<i64: 128, 128>}, {transform_indices = @transform_2, window_bounds = array<i64: 8, 2>}, {transform_indices = @transform_3, window_bounds = array<i64: 2, 128>}, {transform_indices = @transform_4, window_bounds = array<i64: 8, 128>}]} {
    %c0 = arith.constant 0 : index
    %c0_0 = arith.constant 0 : index
    %0 = vector.load %arg4[%c0, %c0_0] : memref<8x2xf32, #tpu.memory_space<vmem>>, vector<8x2xf32>
    %c0_1 = arith.constant 0 : index
    %c0_2 = arith.constant 0 : index
    %1 = vector.load %arg5[%c0_1, %c0_2] : memref<2x128xf32, #tpu.memory_space<vmem>>, vector<2x128xf32>
    %2 = vector.extract_strided_slice %0 {offsets = [0, 0], sizes = [8, 1], strides = [1, 1]} : vector<8x2xf32> to vector<8x1xf32>
    %3 = vector.extract_strided_slice %0 {offsets = [0, 1], sizes = [8, 1], strides = [1, 1]} : vector<8x2xf32> to vector<8x1xf32>
    %4 = vector.extract_strided_slice %1 {offsets = [0, 0], sizes = [1, 128], strides = [1, 1]} : vector<2x128xf32> to vector<1x128xf32>
    %5 = vector.extract_strided_slice %1 {offsets = [1, 0], sizes = [1, 128], strides = [1, 1]} : vector<2x128xf32> to vector<1x128xf32>
    %cst = arith.constant 5.000000e-01 : f32
    %6 = vector.broadcast %cst : f32 to vector<8x1xf32>
    %7 = arith.mulf %6, %3 : vector<8x1xf32>
    %8 = arith.subf %2, %7 : vector<8x1xf32>
    %cst_3 = arith.constant 5.000000e-01 : f32
    %9 = vector.broadcast %cst_3 : f32 to vector<8x1xf32>
    %10 = arith.mulf %9, %3 : vector<8x1xf32>
    %11 = arith.addf %2, %10 : vector<8x1xf32>
    %cst_4 = arith.constant 5.000000e-01 : f32
    %12 = vector.broadcast %cst_4 : f32 to vector<1x128xf32>
    %13 = arith.mulf %12, %5 : vector<1x128xf32>
    %14 = arith.subf %4, %13 : vector<1x128xf32>
    %cst_5 = arith.constant 5.000000e-01 : f32
    %15 = vector.broadcast %cst_5 : f32 to vector<1x128xf32>
    %16 = arith.mulf %15, %5 : vector<1x128xf32>
    %17 = arith.addf %4, %16 : vector<1x128xf32>
    %18 = vector.broadcast %2 : vector<8x1xf32> to vector<8x128xf32>
    %19 = vector.broadcast %4 : vector<1x128xf32> to vector<8x128xf32>
    %20 = arith.subf %18, %19 : vector<8x128xf32>
    %21 = math.absf %20 : vector<8x128xf32>
    %22 = vector.broadcast %3 : vector<8x1xf32> to vector<8x128xf32>
    %23 = vector.broadcast %5 : vector<1x128xf32> to vector<8x128xf32>
    %24 = arith.subf %22, %23 : vector<8x128xf32>
    %25 = math.absf %24 : vector<8x128xf32>
    %26 = arith.addf %21, %25 : vector<8x128xf32>
    %27 = vector.broadcast %11 : vector<8x1xf32> to vector<8x128xf32>
    %28 = vector.broadcast %17 : vector<1x128xf32> to vector<8x128xf32>
    %29 = arith.minimumf %27, %28 : vector<8x128xf32>
    %30 = vector.broadcast %8 : vector<8x1xf32> to vector<8x128xf32>
    %31 = vector.broadcast %14 : vector<1x128xf32> to vector<8x128xf32>
    %32 = arith.maximumf %30, %31 : vector<8x128xf32>
    %33 = arith.subf %29, %32 : vector<8x128xf32>
    %cst_6 = arith.constant 0.000000e+00 : f32
    %34 = vector.broadcast %cst_6 : f32 to vector<8x128xf32>
    %35 = arith.maximumf %33, %34 : vector<8x128xf32>
    %36 = arith.subf %11, %8 : vector<8x1xf32>
    %37 = arith.subf %17, %14 : vector<1x128xf32>
    %38 = vector.broadcast %36 : vector<8x1xf32> to vector<8x128xf32>
    %39 = vector.broadcast %37 : vector<1x128xf32> to vector<8x128xf32>
    %40 = arith.addf %38, %39 : vector<8x128xf32>
    %41 = arith.subf %40, %35 : vector<8x128xf32>
    %cst_7 = arith.constant 0.000000e+00 : f32
    %42 = vector.broadcast %cst_7 : f32 to vector<8x128xf32>
    %43 = arith.subf %42, %35 : vector<8x128xf32>
    %cst_8 = arith.constant 9.99999993E-9 : f32
    %44 = vector.broadcast %cst_8 : f32 to vector<8x128xf32>
    %45 = arith.addf %41, %44 : vector<8x128xf32>
    %46 = arith.divf %43, %45 : vector<8x128xf32>
    %c0_9 = arith.constant 0 : index
    %c0_10 = arith.constant 0 : index
    %47 = vector.load %arg2[%c0_9, %c0_10] : memref<8x128xf32, #tpu.memory_space<vmem>>, vector<8x128xf32>
    %c0_11 = arith.constant 0 : index
    %c0_12 = arith.constant 0 : index
    %48 = vector.load %arg3[%c0_11, %c0_12] : memref<128x128xf32, #tpu.memory_space<vmem>>, vector<128x128xf32>
    %cst_13 = arith.constant dense<0.000000e+00> : vector<8x128xf32>
    %49 = tpu.matmul %47, %48, %cst_13 {dimension_numbers = #tpu.dot_dimension_numbers<[1], [0], [0], [1], [0, 0, 1, 1], [], []>} : vector<8x128xf32>, vector<128x128xf32>, vector<8x128xf32> -> vector<8x128xf32>
    %cst_14 = arith.constant 1.000000e+00 : f32
    %50 = vector.broadcast %cst_14 : f32 to vector<8x128xf32>
    %51 = arith.mulf %50, %26 : vector<8x128xf32>
    %cst_15 = arith.constant 1.000000e+00 : f32
    %52 = vector.broadcast %cst_15 : f32 to vector<8x128xf32>
    %53 = arith.mulf %52, %49 : vector<8x128xf32>
    %54 = arith.addf %51, %53 : vector<8x128xf32>
    %cst_16 = arith.constant 1.000000e+00 : f32
    %55 = vector.broadcast %cst_16 : f32 to vector<8x128xf32>
    %56 = arith.mulf %55, %46 : vector<8x128xf32>
    %57 = arith.addf %54, %56 : vector<8x128xf32>
    %c0_17 = arith.constant 0 : index
    %c0_18 = arith.constant 0 : index
    %58 = vector.load %arg6[%c0_17, %c0_18] : memref<8x128xf32, #tpu.memory_space<vmem>>, vector<8x128xf32>
    tpu.vector_store %arg6[%c0_17, %c0_18], %57 {strides = array<i32>} : memref<8x128xf32, #tpu.memory_space<vmem>>, vector<8x128xf32>,
    return
  }
  func.func @transform_0(%arg0: i32, %arg1: i32) -> (i32, i32) {
    %c0_i32 = arith.constant 0 : i32
    %c0_i32_0 = arith.constant 0 : i32
    return %arg0, %c0_i32 : i32, i32
  }
  func.func @transform_1(%arg0: i32, %arg1: i32) -> (i32, i32) {
    %c0_i32 = arith.constant 0 : i32
    %c0_i32_0 = arith.constant 0 : i32
    return %c0_i32, %arg1 : i32, i32
  }
  func.func @transform_2(%arg0: i32, %arg1: i32) -> (i32, i32) {
    %c0_i32 = arith.constant 0 : i32
    %c0_i32_0 = arith.constant 0 : i32
    return %arg0, %c0_i32 : i32, i32
  }
  func.func @transform_3(%arg0: i32, %arg1: i32) -> (i32, i32) {
    %c0_i32 = arith.constant 0 : i32
    %c0_i32_0 = arith.constant 0 : i32
    return %c0_i32, %arg1 : i32, i32
  }
  func.func @transform_4(%arg0: i32, %arg1: i32) -> (i32, i32) {
    %c0_i32 = arith.constant 0 : i32
    return %arg0, %arg1 : i32, i32
  }
}

</mosaic_0001>

<bundles_post_ra>
// kernel: _cost_matrix_device.3
= control target key start
LH: loop header
LB: loop body
LE: loop exit
PB: predicated region body
PF: predicated region fallthrough
CT: control target
= control target key end

     0   :  { %9 = vsyncpa [#allocation3], 0  ;;  %s847_s0 = inlined_call_operand.vmem [shape: f32[16,128], index: 0, kind: input, shape index: {}]   ;;  %s848_s1 = inlined_call_operand.vmem [shape: f32[128,128], index: 1, kind: input, shape index: {}]   ;;  %s849_s2 = inlined_call_operand.vmem [shape: f32[16,2], index: 2, kind: input, shape index: {}]   ;;  %s850_s3 = inlined_call_operand.vmem [shape: f32[2,128], index: 3, kind: input, shape index: {}]   ;;  %s851_s4 = inlined_call_operand.hbm [shape: f32[16,128], index: 4, kind: output, shape index: {}]  }
   0x1   :  { %11 = vsyncpa [#allocation3 + $0x1], 0  ;;  %s685_s15 = smov 0   ;;  %s687_s16 = smov 0  }
   0x2   :  { %s689_s17 = smov 0   ;;  %s691_s18 = smov 0  }
   0x3   :  { %s693_s19 = smov 0   ;;  %s695_s20 = smov 0  }
   0x4 LB: > { %s499_s21 = sadd.s32 4294967295, %s655_s20   ;;  %s500_s22 = sadd.s32 4294967294, %s655_s20   ;;  %s655_s20 = sphi %s695_s20, %s17_s20   ;;  %s651_s19 = sphi %s693_s19, %s858_s19   ;;  %s647_s18 = sphi %s691_s18, %s857_s18   ;;  %s643_s17 = sphi %s689_s17, %s856_s17   ;;  %s639_s16 = sphi %s687_s16, %s855_s16   ;;  %s635_s15 = sphi %s685_s15, %s854_s15  }
   0x5   : > { %s29_s23 = sadd.s32 1, %s651_s19  ;;  %s142_s24 = sadd.s32 1, %s643_s17 }
   0x6   : > { %p31_p0 = scmp.ge.s32.totalorder %s29_s23, 2  ;;  %p152_p1 = scmp.ne.s32.totalorder %s643_s17, %s639_s16 }
   0x7   : > { %p153_p2 = scmp.eq.s32.totalorder %s499_s21, 1  ;;  %p158_p3 = scmp.ne.s32.totalorder %s639_s16, %s635_s15 }
   0x8   : > { %s860_s23 = smov (%p31_p0, %s29_s23), 0  ;;  %p159_p5 = scmp.eq.s32.totalorder %s500_s22, 1 }
   0x9   : > { %p725_p4 = por %p153_p2, %p152_p1  ;;  %s137_s26 = ssub.s32 %s651_s19, %s860_s23 }
   0xa   : > { %p505_p6 = scmp.ge.s32.totalorder %s655_s20, 1  ;;  %p140_p7 = scmp.eq.s32.totalorder %s137_s26, 0 }
   0xb   : > { %p732_p8 = por %p159_p5, %p158_p3  ;;  %p205_p9 = scmp.lt.s32.totalorder %s655_s20, 3 }
   0xc   : > { %s738_s28 = scalar_select %p140_p7, %s643_s17, %s142_s24  }
   0xd   : > { %p206_p10 = pnand %p505_p6, %p205_p9 }
   0xe   : > { %p242_p11 = scmp.lt.s32.totalorder (!%p206_p10), %s647_s18, 1  ;;  %s657_s30 = smov (!%p206_p10), 127  }
   0xf   : > { %209 = sbr.rel (%p206_p10) target bundleno = 297 (0x129), region = 36  ;;  %s239_s22 = sand.u32 (!%p206_p10), 1, %s639_s16  }
  0x10   : > { %s506_s24 = sshll.u32 (!%p206_p10), %s239_s22, 3  ;;  %s510_s26 = sshll.u32 (!%p206_p10), %s647_s18, 3 }
  0x11   : > { %s384_s5 = scalar_lea.hbm (!%p206_p10), %s851_s4, %s510_s26  ;;  %s373_s9 = scalar_lea.sflag (!%p206_p10), [#allocation3], %s239_s22 }
  0x12   : > { %s388_s8 = sshll.u32 (!%p206_p10), %s384_s5, 4  ;;  %s389_s8 = int_to_ptr.hbm [resolvable:$true] %s388_s8 }
  0x13   : > { %s591_s11 = sshra.s32 (!%p206_p10), %s389_s8, 4  ;;  %s592_s11 = int_to_ptr.hbm [resolvable:$true] %s591_s11 }
  0x14   : > { %v348_v0 = vld [vmem:[%s848_s1 + $0x78] sm:$0xff]  ;;  %v347_v1 = vld [vmem:[%s848_s1 + $0x70] sm:$0xff]  ;;  %s748_s7 = scalar_select %p242_p11, %s647_s18, 1  ;;  %v346_v2 = vld [vmem:[%s848_s1 + $0x68] sm:$0xff]  ;;  %v658_v13 = vmov 0   ;;  %v659_v20 = vmov 1  }
  0x15   : > { %349 = vmatpush.msra.mxu0 %v348_v0  ;;  %v345_v3 = vld [vmem:[%s848_s1 + $0x60] sm:$0xff]  ;;  %v344_v5 = vld [vmem:[%s848_s1 + $0x58] sm:$0xff]  ;;  %v343_v7 = vld [vmem:[%s848_s1 + $0x50] sm:$0xff]  ;;  %572 = vset.pattern.permute.xlu1 %v658_v13  ;;  %s241_s18 = scalar_lea.vmem [#allocation2], %s506_s24  ;;  %s593_s12 = scalar_lea.hbm %s592_s11, 8 }
  0x16   : > { %s507_s10 = sshll.u32 %s748_s7, 3  ;;  %v342_v8 = vld [vmem:[%s848_s1 + $0x48] sm:$0xff]  ;;  %v341_v9 = vld [vmem:[%s848_s1 + $0x40] sm:$0xff]  ;;  %v340_v10 = vld [vmem:[%s848_s1 + $0x38] sm:$0xff]  ;;  %571 = vset.pattern.permute.xlu0 %v658_v13  ;;  %573 = vset.pattern.permute.xlu2 %v658_v13  ;;  %s386_s6 = sshll.u32 %s241_s18, 4  ;;  %s387_s6 = int_to_ptr.vmem [resolvable:$true] %s386_s6 }
  0x17   : > { %350 = vmatpush.msra.mxu0 %v347_v1  ;;  %s253_s21 = scalar_lea.vmem %s849_s2, %s507_s10  ;;  %v339_v11 = vld [vmem:[%s848_s1 + $0x30] sm:$0xff]  ;;  %v338_v12 = vld [vmem:[%s848_s1 + $0x28] sm:$0xff]  ;;  %v337_v14 = vld [vmem:[%s848_s1 + $0x20] sm:$0xff]  ;;  %s245_s13 = scalar_lea.vmem %s847_s0, %s507_s10 }
  0x18   : > { %v258_v4 = vld [vmem:[%s253_s21] sm:$0xff]  ;;  %v336_v15 = vld [vmem:[%s848_s1 + $0x18] sm:$0xff]  ;;  %v335_v16 = vld [vmem:[%s848_s1 + $0x10] sm:$0xff]  ;;  %p594_p12 = scmp.ne.s32.totalorder %s592_s11, %s593_s12  ;;  %s597_s21 = scalar_lea.hbm %s851_s4, 16 }
  0x19   : > { %351 = vmatpush.msra.mxu0 %v346_v2  ;;  %v260_v6 = vmul.f32 0.5, %v258_v4  ;;  %275 = vperm.xlu2 %573, %v258_v4   ;;  %v334_v17 = vld [vmem:[%s848_s1 + $0x8] sm:$0xff]  ;;  %v333_v18 = vld [vmem:[%s848_s1] sm:$0xff]  ;;  %p598_p1 = scmp.lt.s32.totalorder %s592_s11, %s851_s4  ;;  %p599_p2 = scmp.lt.s32.totalorder %s597_s21, %s593_s12 }
  0x1a   : > { %v332_v19 = vld [vmem:[%s245_s13] sm:$0xff]  ;;  %p595_p13 = pnand %p594_p12, %p725_p4 }
  0x1b   : > { %352 = vmatpush.msra.mxu0 %v345_v3  ;;  %262 = vrot.lane.b32.xlu0 %v260_v6, %s657_s30  ;;  %v259_v25 = vld [vmem:[%s850_s3] sm:$0x3]  ;;  %p600_p3 = por %p599_p2, %p598_p1 }
  0x1c   : > { %v267_v26 = vmul.f32 0.5, %v259_v25  ;;  %v278_v45 = vperm.slane %v259_v25, 0  ;;  %v285_v46 = vperm.slane %v259_v25, 1  ;;  %p596_p0 = pneg %p595_p13 }
  0x1d   : > { %353 = vmatpush.msra.mxu0 %v344_v5 }
  0x1e   : > { %v269_v27 = vrot.slane %v267_v26, 1  ;;  %p601_p5 = pnand %p600_p3, %p596_p0 }
  0x1f   : > { %354 = vmatpush.msra.mxu0 %v343_v7 }
  0x20   : > { %v272_v28 = vadd.f32 %v269_v27, %v259_v25  ;;  %v271_v29 = vsub.f32 %v259_v25, %v269_v27 }
  0x21   : > { %355 = vmatpush.msra.mxu0 %v342_v8  ;;  %574 = vset.pattern.permute.xlu2 %v659_v20 }
  0x22   : > { %282 = vperm.xlu2 %574, %v258_v4   ;;  %v294_v30 = vperm.slane %v272_v28, 0  ;;  %v301_v31 = vperm.slane %v271_v29, 0  ;;  %v306_v36 = vsub.f32 %v272_v28, %v271_v29 }
  0x23   : > { %356 = vmatpush.msra.mxu0 %v341_v9 }
  0x24   : > { %v312_v38 = vperm.slane %v306_v36, 0 }
  0x25   : > { %357 = vmatpush.msra.mxu0 %v340_v10 }
  0x27   : > { %358 = vmatpush.msra.mxu0 %v339_v11 }
  0x29   : > { %359 = vmatpush.msra.mxu0 %v338_v12 }
  0x2b   : > { %360 = vmatpush.msra.mxu0 %v337_v14 }
  0x2d   : > { %361 = vmatpush.msra.mxu0 %v336_v15 }
  0x2f   : > { %362 = vmatpush.msra.mxu0 %v335_v16 }
  0x31   : > { %363 = vmatpush.msra.mxu0 %v334_v17 }
  0x33   : > { %364 = vmatpush.msra.mxu0 %v333_v18 }
  0x34   : > { %365 = vmatmul.f32.vlgmr.msra.gmra.mxu0 %v332_v19 }
  0x73   : > { %v276_v39 = vpop.permute.xlu2 %275 }
  0x74   : > { %v279_v48 = vsub.f32 %v276_v39, %v278_v45 }
  0x76   : > { %v280_v52 = vand.u32 2147483647, %v279_v48 }
  0x7c   : > { %v283_v47 = vpop.permute.xlu2 %282 }
  0x7d   : > { %v286_v49 = vsub.f32 %v283_v47, %v285_v46 }
  0x7f   : > { %v287_v54 = vand.u32 2147483647, %v286_v49 }
  0x81   : > { %v288_v58 = vadd.f32 %v287_v54, %v280_v52 }
  0x8d   : > { %v263_v21 = vpop.permute.xlu0 %262 }
  0x8e   : > { %v266_v22 = vadd.f32 %v263_v21, %v258_v4  ;;  %v265_v23 = vsub.f32 %v258_v4, %v263_v21 }
  0x90   : > { %291 = vperm.xlu0 %571, %v266_v22   ;;  %298 = vperm.xlu1 %572, %v265_v23   ;;  %v305_v24 = vsub.f32 %v266_v22, %v265_v23 }
  0x98   : > { %309 = vperm.xlu1 %572, %v305_v24  }
  0xb1   : > { %v366_v61 = vpop.f32.mrf.mxu0 }
  0xb2   : > { %v369_v2 = vadd.f32 %v366_v61, %v288_v58 }
 0x102   : > { %v292_v32 = vpop.permute.xlu0 %291  ;;  %v299_v33 = vpop.permute.xlu1 %298 }
 0x103   : > { %v295_v34 = vmin.f32 %v292_v32, %v294_v30  ;;  %v302_v35 = vmax.f32 %v299_v33, %v301_v31 }
 0x105   : > { %v303_v37 = vsub.f32 %v295_v34, %v302_v35 }
 0x107   : > { %v304_v41 = vmax.f32 %v303_v37, 0.0 }
 0x109   : > { %v315_v62 = vsub.f32 0.0, %v304_v41 }
 0x10a   : > { %v310_v40 = vpop.permute.xlu1 %309 }
 0x10b   : > { %v313_v42 = vadd.f32 %v312_v38, %v310_v40 }
 0x10d   : > { %v314_v43 = vsub.f32 %v313_v42, %v304_v41 }
 0x10f   : > { %v316_v44 = vadd.f32 1e-08, %v314_v43 }
 0x111   : > { %575 = vrcp.f32 %v316_v44  ;;  %v328_v55 = vand.u32 2147483648, %v316_v44  ;;  %v326_v57 = vand.u32 2147483647, %v316_v44  ;;  %vm322_vm1 = vweird.f32 %v316_v44 }
 0x113   : > { %v329_v60 = vor.u32 1.1754944e-38, %v328_v55  ;;  %vm327_vm3 = vcmp.eq.f32.partialorder %v326_v57, 8.507059e+37 }
 0x117   : > { %v576_v50 = vpop.eup %575 }
 0x118   : > { %v318_v51 = vmul.f32 %v576_v50, %v316_v44  ;;  %vm323_vm0 = vweird.f32 %v576_v50 }
 0x119   : > { %vm324_vm2 = vmor %vm322_vm1, %vm323_vm0 }
 0x11a   : > { %v319_v53 = vsub.f32 1.0, %v318_v51 }
 0x11c   : > { %v320_v56 = vmul.f32 %v576_v50, %v319_v53 }
 0x11e   : > { %v321_v59 = vadd.f32 %v576_v50, %v320_v56 }
 0x120   : > { %v325_v63 = vsel %vm324_vm2, %v576_v50, %v321_v59 }
 0x121   : > { %v330_v0 = vsel %vm327_vm3, %v329_v60, %v325_v63 }
 0x122   : > { %v331_v1 = vmul.f32 %v330_v0, %v315_v62 }
 0x124   : > { %v370_v3 = vadd.f32 %v369_v2, %v331_v1 }
 0x126   : > { %371 = vst [vmem:[%s241_s18] sm:$0xff] %v370_v3 }
 0x127   : > { %604 = shalt.err (!%p601_p5)
}
 0x128   : > { %513 = dma.vmem_to_hbm [thread:$0]  (%p725_p4), %s387_s6, 128, %s389_s8, %s373_s9  }
 0x129 PF: > { %p519_p6 = scmp.ge.s32.totalorder %s655_s20, 2  ;;  %s400_s22 = sand.u32 1, %s635_s15  }
 0x12a   : > { %s401_s24 = scalar_lea.sflag [#allocation3], %s400_s22 }
 0x12b   : > { %p516_p7 = pnand %p519_p6, %p732_p8 }
 0x12d   : > { %p517_p9 = pneg %p516_p7 }
 0x12f   : > { %630 = dma.done.wait (%p517_p9), %s401_s24, 128  }
 0x130   : > { %632 = vsyncadd (%p517_p9), %s401_s24, 4294967168  ;;  %s17_s20 = sadd.s32 1, %s655_s20   ;;  %s854_s15 = smov %s639_s16 }
 0x131   : > { %p14_p10 = scmp.ge.s32.totalorder %s17_s20, 4   ;;  %s855_s16 = smov %s643_s17 }
 0x132   : > { %s856_s17 = smov %s738_s28  ;;  %s857_s18 = smov %s651_s19 }
 0x133   : > { %s858_s19 = smov %s860_s23  ;;  %16 = sbr.rel (!%p14_p10) target bundleno = 4 (0x4), region = 80 }
 0x138   :  { %407 = vsyncpa [#allocation3], 1 }
 0x139   :  { %409 = vsyncpa [#allocation3 + $0x1], 1 }

// kernel: _cost_matrix_device.2
= control target key start
LH: loop header
LB: loop body
LE: loop exit
PB: predicated region body
PF: predicated region fallthrough
CT: control target
= control target key end

     0   :  { %s230_s6 = smov 0   ;;  %s250_s0 = inlined_call_operand.vmem [shape: f32[16,128], index: 0, kind: input, shape index: {}]   ;;  %s251_s1 = inlined_call_operand.vmem [shape: f32[16,128], index: 1, kind: output, shape index: {}]  }
   0x1 LB: > { %s189_s7 = sadd.s32 4294967295, %s218_s6   ;;  %p193_p0 = scmp.ge.s32.totalorder %s218_s6, 1  ;;  %s218_s6 = sphi %s230_s6, %s11_s6  }
   0x2   : > { %p86_p1 = scmp.lt.s32.totalorder %s218_s6, 3 }
   0x4   : > { %p87_p2 = pnand %p193_p0, %p86_p1 }
   0x5   : > { %p104_p3 = scmp.lt.s32.totalorder (!%p87_p2), %s189_s7, 1 }
   0x6   : > { %90 = sbr.rel (%p87_p2) target bundleno = 63 (0x3f), region = 24 }
   0xb   : > { %s253_s7 = smov (!%p104_p3, %s189_s7), 1 }
   0xc   : > { %s194_s8 = sshll.u32 %s253_s7, 3 }
   0xd   : > { %s107_s11 = scalar_lea.vmem %s250_s0, %s194_s8  ;;  %s111_s14 = scalar_lea.vmem %s251_s1, %s194_s8 }
   0xe   : > { %v112_v0 = vld [vmem:[%s107_s11] sm:$0xff] }
   0xf   : > { %v115_v1 = vand.u32 2147483647, %v112_v0  ;;  %v113_v6 = vsub.f32 0.0, %v112_v0 }
  0x11   : > { %v116_v2 = vsub.f32 0.0, %v115_v1  ;;  %v114_v7 = vmax.f32 %v113_v6, 0.0 }
  0x13   : > { %v117_v3 = vmul.f32 1.442695, %v116_v2 }
  0x15   : > { %206 = vpow2.f32 %v117_v3 }
  0x1b   : > { %v207_v4 = vpop.eup %206 }
  0x1c   : > { %v119_v5 = vadd.f32 1.0, %v207_v4 }
  0x1e   : > { %208 = vlog2.f32 %v119_v5 }
  0x24   : > { %v209_v8 = vpop.eup %208 }
  0x25   : > { %v121_v9 = vmul.f32 0.6931472, %v209_v8 }
  0x27   : > { %v122_v10 = vadd.f32 %v121_v9, %v114_v7 }
  0x29   : > { %v123_v11 = vsub.f32 0.0, %v122_v10  ;;  %v128_v15 = vadd.f32 %v122_v10, %v112_v0 }
  0x2b   : > { %v124_v12 = vmul.f32 1.442695, %v123_v11 }
  0x2d   : > { %210 = vpow2.f32 %v124_v12 }
  0x33   : > { %v211_v13 = vpop.eup %210 }
  0x34   : > { %v126_v14 = vmul.f32 %v211_v13, %v211_v13  ;;  %v130_v16 = vsub.f32 1.0, %v211_v13 }
  0x36   : > { %v127_v17 = vmul.f32 0.75, %v126_v14  ;;  %v131_v18 = vmul.f32 %v130_v16, %v130_v16 }
  0x38   : > { %v129_v19 = vmul.f32 %v128_v15, %v127_v17  ;;  %v132_v20 = vmul.f32 0.25, %v131_v18 }
  0x3a   : > { %v133_v21 = vmul.f32 %v132_v20, %v122_v10 }
  0x3c   : > { %v134_v22 = vsub.f32 %v133_v21, %v129_v19 }
  0x3e   : > { %135 = vst [vmem:[%s111_s14] sm:$0xff] %v134_v22 }
  0x3f PF: > { %s11_s6 = sadd.s32 1, %s218_s6  }
  0x40   : > { %p8_p4 = scmp.ge.s32.totalorder %s11_s6, 4  }
  0x42   :  { %10 = sbr.rel (!%p8_p4) target bundleno = 1 (0x1), region = 54 }

</bundles_post_ra>
